<compile_context>
chip_gen: v6e
topology: v6e:2x2x1
jax: 0.10.0
libtpu: 0.0.40
codegen_flags: <defaults>
</compile_context>

<pallas_src>
import jax
import jax.numpy as jnp
from jax.experimental import pallas as pl
from jax.experimental.pallas import tpu as pltpu

SELU_SCALE = 1.0507009873554805
SELU_ALPHA = 1.6732632423543772
BN_EPS = 1e-5


def gat_kernel(x_ref, w_ap_ref, b_ap_ref, a_ref, w_fused_ref, b_fused_ref,
               out_ref):
    # x_ref:       (B_tile, N, D)  input nodes for this batch tile
    # w_ap_ref:    (D, E)          att_proj weight, pre-transposed
    # b_ap_ref:    (1, E)          att_proj bias
    # a_ref:       (1, E)          att_weight row, 1/temperature folded in
    # w_fused_ref: (2D, E)         [W_wa^T ; W_woa^T], BatchNorm scale folded in
    # b_fused_ref: (1, E)          (b_wa + b_woa) * bn_scale + bn_shift
    # out_ref:     (B_tile, N, E)
    b_tile, n, d = x_ref.shape
    e = out_ref.shape[-1]

    x = x_ref[...].astype(jnp.float32)                      # (B, N, D)

    # 1) Pairwise node products for the whole tile, stacked (B*N*N, D):
    #    row b*N*N + i*N + j = x[b,i] * x[b,j].  Pure VPU broadcast multiply;
    #    the reshape only merges leading dims (layout-free).
    pair = (x[:, :, None, :] * x[:, None, :, :]).reshape(b_tile * n * n, d)

    # 2) att_proj + tanh for every pair in ONE MXU matmul (default precision).
    act = jnp.tanh(
        jnp.dot(pair, w_ap_ref[...], preferred_element_type=jnp.float32)
        + b_ap_ref[...])                                     # (B*N*N, E)

    # 3) Linear(E -> 1) head (temperature already folded into a_ref):
    #    multiply + lane reduce, producing logits[b, i, j] with keys j last.
    logits = jnp.sum(act.reshape(b_tile, n, n, e) * a_ref[...], axis=-1)

    # 4) One vectorized softmax over keys j (lane axis).
    m = jnp.max(logits, axis=-1, keepdims=True)
    p = jnp.exp(logits - m)
    att = p / jnp.sum(p, axis=-1, keepdims=True)             # (B, N, N)

    # 5) Attention-weighted aggregation as a single batched MXU matmul.
    agg = jnp.einsum("bij,bjd->bid", att, x,
                     preferred_element_type=jnp.float32)     # (B, N, D)

    # 6) Fused projection: [agg, x] @ [W_wa^T ; W_woa^T] (BN folded in weights).
    feats = jnp.concatenate([agg, x], axis=-1).reshape(b_tile * n, 2 * d)
    y = (jnp.dot(feats, w_fused_ref[...], preferred_element_type=jnp.float32)
         + b_fused_ref[...])                                 # (B*N, E)

    # 7) SELU and one dense store for the whole tile.
    out = SELU_SCALE * jnp.where(y > 0.0, y, SELU_ALPHA * (jnp.exp(y) - 1.0))
    out_ref[...] = out.reshape(b_tile, n, e).astype(out_ref.dtype)


def _pick_batch_tile(B, N, D, E):
    """VMEM-bounded batch tile; grid >= 2 when B >= 2 (pipelining / v7x TCs)."""
    per_b = 4 * (2 * N * (D + E)          # double-buffered x + out blocks
                 + N * N * (D + E)        # pair + tanh activations (live at once)
                 + 4 * N * N)             # logits / softmax temporaries
    budget = 12 * 1024 * 1024             # stay well inside the scoped VMEM limit
    tile = max(1, min(B, budget // max(per_b, 1)))
    if B >= 2:
        tile = min(tile, max(1, B // 2))  # grid >= 2: DMA overlap + v7x 2-TC split
    while B % tile:                       # keep the grid exact
        tile -= 1
    return max(tile, 1)


def graph_attention_layer(x, params, temperature=1.0, batch_tile=None):
    """x: (B, N, D) f32; params: dict of torch-layout tensors; returns (B, N, E)."""
    B, N, D = x.shape
    E = params["w_ap"].shape[0]
    if batch_tile is None:
        batch_tile = _pick_batch_tile(B, N, D, E)
    assert B % batch_tile == 0

    f32 = jnp.float32
    inv_temp = 1.0 / float(temperature)

    w_ap_t = params["w_ap"].astype(f32).T                          # (D, E)
    b_ap = params["b_ap"].astype(f32).reshape(1, E)
    a_row = params["att_w"].astype(f32).reshape(1, E) * inv_temp   # temp folded

    bn_scale = (params["bn_gamma"].astype(f32)
                / jnp.sqrt(params["bn_var"].astype(f32) + BN_EPS))
    bn_shift = params["bn_beta"].astype(f32) - params["bn_mean"].astype(f32) * bn_scale

    # Fused projection weight/bias with BatchNorm folded in (wrapper-side, free).
    w_fused = jnp.concatenate(
        [params["w_wa"].astype(f32).T, params["w_woa"].astype(f32).T],
        axis=0) * bn_scale[None, :]                                # (2D, E)
    b_fused = ((params["b_wa"] + params["b_woa"]).astype(f32) * bn_scale
               + bn_shift).reshape(1, E)

    rep2 = lambda i: (0, 0)                 # replicated parameter blocks

    return pl.pallas_call(
        gat_kernel,
        out_shape=jax.ShapeDtypeStruct((B, N, E), x.dtype),
        grid=(B // batch_tile,),
        in_specs=[
            pl.BlockSpec((batch_tile, N, D), lambda i: (i, 0, 0)),  # x tile
            pl.BlockSpec((D, E), rep2),                             # att_proj W^T
            pl.BlockSpec((1, E), rep2),                             # att_proj bias
            pl.BlockSpec((1, E), rep2),                             # att head / temp
            pl.BlockSpec((2 * D, E), rep2),                         # fused proj W
            pl.BlockSpec((1, E), rep2),                             # fused bias
        ],
        out_specs=pl.BlockSpec((batch_tile, N, E), lambda i: (i, 0, 0)),
        compiler_params=pltpu.CompilerParams(
            dimension_semantics=("parallel",),   # batch tiles split over v7x TCs
            vmem_limit_bytes=32 * 1024 * 1024),
    )(x, w_ap_t, b_ap, a_row, w_fused, b_fused)


def graph_attention_reference(x, params, temperature=1.0):
    """Pure-JAX reference mirroring the PyTorch module (eval mode), true f32."""
    hp = jax.lax.Precision.HIGHEST
    pm = x[:, :, None, :] * x[:, None, :, :]                          # (B,N,N,D)
    am = jnp.tanh(jnp.einsum("bijd,ed->bije", pm, params["w_ap"], precision=hp)
                  + params["b_ap"])
    am = jnp.einsum("bije,eo->bijo", am, params["att_w"], precision=hp)
    am = am / temperature
    am = jax.nn.softmax(am, axis=-2)                                  # over j
    agg = jnp.einsum("bij,bjd->bid", am[..., 0], x, precision=hp)
    y = (jnp.einsum("bid,ed->bie", agg, params["w_wa"], precision=hp)
         + params["b_wa"]
         + jnp.einsum("bid,ed->bie", x, params["w_woa"], precision=hp)
         + params["b_woa"])
    scale = params["bn_gamma"] / jnp.sqrt(params["bn_var"] + BN_EPS)
    y = (y - params["bn_mean"]) * scale + params["bn_beta"]
    return SELU_SCALE * jnp.where(y > 0.0, y, SELU_ALPHA * (jnp.exp(y) - 1.0))


if __name__ == "__main__":
    key = jax.random.PRNGKey(0)
    ks = jax.random.split(key, 12)

    B, N, D_IN, D_OUT = 2, 8, 32, 32     # batch, n_nodes, in_dim, out_dim
    temperature = 2.0                    # exercises the temperature path

    x = jax.random.normal(ks[0], (B, N, D_IN), jnp.float32)

    # nn.Linear init: U(-1/sqrt(in_dim), 1/sqrt(in_dim)); att_weight: xavier_normal.
    bound = 1.0 / (D_IN ** 0.5)
    params = {
        "w_ap":  jax.random.uniform(ks[1], (D_OUT, D_IN), jnp.float32, -bound, bound),
        "b_ap":  jax.random.uniform(ks[2], (D_OUT,), jnp.float32, -bound, bound),
        "att_w": jax.random.normal(ks[3], (D_OUT, 1), jnp.float32)
                 * (2.0 / (D_OUT + 1)) ** 0.5,
        "w_wa":  jax.random.uniform(ks[4], (D_OUT, D_IN), jnp.float32, -bound, bound),
        "b_wa":  jax.random.uniform(ks[5], (D_OUT,), jnp.float32, -bound, bound),
        "w_woa": jax.random.uniform(ks[6], (D_OUT, D_IN), jnp.float32, -bound, bound),
        "b_woa": jax.random.uniform(ks[7], (D_OUT,), jnp.float32, -bound, bound),
        "bn_gamma": jax.random.uniform(ks[8], (D_OUT,), jnp.float32, 0.5, 1.5),
        "bn_beta":  jax.random.normal(ks[9], (D_OUT,), jnp.float32) * 0.1,
        "bn_mean":  jax.random.normal(ks[10], (D_OUT,), jnp.float32) * 0.1,
        "bn_var":   jax.random.uniform(ks[11], (D_OUT,), jnp.float32, 0.5, 1.5),
    }

    out = graph_attention_layer(x, params, temperature=temperature)
    out = jax.block_until_ready(out)

    ref = graph_attention_reference(x, params, temperature=temperature)
    assert out.shape == ref.shape, (out.shape, ref.shape)
    max_err = float(jnp.max(jnp.abs(out - ref)))
    # Kernel matmuls use the default (single-pass, bf16-operand) MXU path per
    # the perf review; the reference is true-f32 HIGHEST, so allow a few e-2.
    assert jnp.allclose(out, ref, atol=3e-2, rtol=3e-2), f"mismatch, max_err={max_err}"

    print("KERNEL_OK")
</pallas_src>

<mosaic_0001>
module attributes {stable_mosaic.version = 11 : i64} {
  func.func @gat_kernel(%arg0: i32, %arg1: memref<1x8x32xf32, #tpu.memory_space<vmem>>, %arg2: memref<32x32xf32, #tpu.memory_space<vmem>>, %arg3: memref<1x32xf32, #tpu.memory_space<vmem>>, %arg4: memref<1x32xf32, #tpu.memory_space<vmem>>, %arg5: memref<64x32xf32, #tpu.memory_space<vmem>>, %arg6: memref<1x32xf32, #tpu.memory_space<vmem>>, %arg7: memref<1x8x32xf32, #tpu.memory_space<vmem>>) attributes {dimension_semantics = [#tpu.dimension_semantics<parallel>], iteration_bounds = array<i64: 2>, scalar_prefetch = 0 : i64, scratch_operands = 0 : i64, tpu.core_type = #tpu.core_type<tc>, window_params = [{transform_indices = @transform_0, window_bounds = array<i64: 1, 8, 32>}, {pipeline_mode = #tpu.pipeline_mode<synchronous>, transform_indices = @transform_1, window_bounds = array<i64: 32, 32>}, {pipeline_mode = #tpu.pipeline_mode<synchronous>, transform_indices = @transform_2, window_bounds = array<i64: 1, 32>}, {pipeline_mode = #tpu.pipeline_mode<synchronous>, transform_indices = @transform_3, window_bounds = array<i64: 1, 32>}, {pipeline_mode = #tpu.pipeline_mode<synchronous>, transform_indices = @transform_4, window_bounds = array<i64: 64, 32>}, {pipeline_mode = #tpu.pipeline_mode<synchronous>, transform_indices = @transform_5, window_bounds = array<i64: 1, 32>}, {transform_indices = @transform_6, window_bounds = array<i64: 1, 8, 32>}]} {
    %c0 = arith.constant 0 : index
    %c0_0 = arith.constant 0 : index
    %c0_1 = arith.constant 0 : index
    %0 = vector.load %arg1[%c0, %c0_0, %c0_1] : memref<1x8x32xf32, #tpu.memory_space<vmem>>, vector<1x8x32xf32>
    %1 = vector.shape_cast %0 : vector<1x8x32xf32> to vector<1x8x1x32xf32>
    %2 = vector.shape_cast %0 : vector<1x8x32xf32> to vector<1x1x8x32xf32>
    %3 = vector.broadcast %1 : vector<1x8x1x32xf32> to vector<1x8x8x32xf32>
    %4 = vector.broadcast %2 : vector<1x1x8x32xf32> to vector<1x8x8x32xf32>
    %5 = arith.mulf %3, %4 : vector<1x8x8x32xf32>
    %6 = vector.shape_cast %5 : vector<1x8x8x32xf32> to vector<64x32xf32>
    %c0_2 = arith.constant 0 : index
    %c0_3 = arith.constant 0 : index
    %7 = vector.load %arg2[%c0_2, %c0_3] : memref<32x32xf32, #tpu.memory_space<vmem>>, vector<32x32xf32>
    %cst = arith.constant dense<0.000000e+00> : vector<64x32xf32>
    %8 = tpu.matmul %6, %7, %cst {dimension_numbers = #tpu.dot_dimension_numbers<[1], [0], [0], [1], [0, 0, 1, 1], [], []>} : vector<64x32xf32>, vector<32x32xf32>, vector<64x32xf32> -> vector<64x32xf32>
    %c0_4 = arith.constant 0 : index
    %c0_5 = arith.constant 0 : index
    %9 = vector.load %arg3[%c0_4, %c0_5] : memref<1x32xf32, #tpu.memory_space<vmem>>, vector<1x32xf32>
    %10 = vector.broadcast %9 : vector<1x32xf32> to vector<64x32xf32>
    %11 = arith.addf %8, %10 : vector<64x32xf32>
    %12 = math.tanh %11 : vector<64x32xf32>
    %13 = vector.shape_cast %12 : vector<64x32xf32> to vector<1x8x8x32xf32>
    %c0_6 = arith.constant 0 : index
    %c0_7 = arith.constant 0 : index
    %14 = vector.load %arg4[%c0_6, %c0_7] : memref<1x32xf32, #tpu.memory_space<vmem>>, vector<1x32xf32>
    %15 = vector.shape_cast %14 : vector<1x32xf32> to vector<1x1x1x32xf32>
    %16 = vector.broadcast %15 : vector<1x1x1x32xf32> to vector<1x8x8x32xf32>
    %17 = arith.mulf %13, %16 : vector<1x8x8x32xf32>
    %cst_8 = arith.constant dense<0.000000e+00> : vector<1x8x8xf32>
    %18 = vector.multi_reduction <add>, %17, %cst_8 [3] : vector<1x8x8x32xf32> to vector<1x8x8xf32>
    %cst_9 = arith.constant dense<0xFF800000> : vector<1x8xf32>
    %19 = vector.multi_reduction <maximumf>, %18, %cst_9 [2] : vector<1x8x8xf32> to vector<1x8xf32>
    %20 = vector.shape_cast %19 : vector<1x8xf32> to vector<1x8x1xf32>
    %21 = vector.broadcast %20 : vector<1x8x1xf32> to vector<1x8x8xf32>
    %22 = arith.subf %18, %21 : vector<1x8x8xf32>
    %23 = math.exp %22 : vector<1x8x8xf32>
    %cst_10 = arith.constant dense<0.000000e+00> : vector<1x8xf32>
    %24 = vector.multi_reduction <add>, %23, %cst_10 [2] : vector<1x8x8xf32> to vector<1x8xf32>
    %25 = vector.shape_cast %24 : vector<1x8xf32> to vector<1x8x1xf32>
    %26 = vector.broadcast %25 : vector<1x8x1xf32> to vector<1x8x8xf32>
    %27 = arith.divf %23, %26 : vector<1x8x8xf32>
    "tpu.trace_start"() <{level = 10 : i32, message = "bij,bjd->bid"}> : () -> ()
    %cst_11 = arith.constant dense<0.000000e+00> : vector<1x8x32xf32>
    %28 = tpu.matmul %27, %0, %cst_11 {dimension_numbers = #tpu.dot_dimension_numbers<[2], [1], [1], [2], [0, 0, 0, 1, 1, 2], [0], [0]>} : vector<1x8x8xf32>, vector<1x8x32xf32>, vector<1x8x32xf32> -> vector<1x8x32xf32>
    "tpu.trace_stop"() : () -> ()
    %29 = tpu.concatenate %28, %0 in 2 : vector<1x8x32xf32>, vector<1x8x32xf32> -> vector<1x8x64xf32>
    %30 = vector.shape_cast %29 : vector<1x8x64xf32> to vector<8x64xf32>
    %c0_12 = arith.constant 0 : index
    %c0_13 = arith.constant 0 : index
    %31 = vector.load %arg5[%c0_12, %c0_13] : memref<64x32xf32, #tpu.memory_space<vmem>>, vector<64x32xf32>
    %cst_14 = arith.constant dense<0.000000e+00> : vector<8x32xf32>
    %32 = tpu.matmul %30, %31, %cst_14 {dimension_numbers = #tpu.dot_dimension_numbers<[1], [0], [0], [1], [0, 0, 1, 1], [], []>} : vector<8x64xf32>, vector<64x32xf32>, vector<8x32xf32> -> vector<8x32xf32>
    %c0_15 = arith.constant 0 : index
    %c0_16 = arith.constant 0 : index
    %33 = vector.load %arg6[%c0_15, %c0_16] : memref<1x32xf32, #tpu.memory_space<vmem>>, vector<1x32xf32>
    %34 = vector.broadcast %33 : vector<1x32xf32> to vector<8x32xf32>
    %35 = arith.addf %32, %34 : vector<8x32xf32>
    %cst_17 = arith.constant 0.000000e+00 : f32
    %36 = vector.broadcast %cst_17 : f32 to vector<8x32xf32>
    %37 = arith.cmpf ogt, %35, %36 : vector<8x32xf32>
    %38 = math.exp %35 : vector<8x32xf32>
    %cst_18 = arith.constant 1.000000e+00 : f32
    %39 = vector.broadcast %cst_18 : f32 to vector<8x32xf32>
    %40 = arith.subf %38, %39 : vector<8x32xf32>
    %cst_19 = arith.constant 1.67326319 : f32
    %41 = vector.broadcast %cst_19 : f32 to vector<8x32xf32>
    %42 = arith.mulf %41, %40 : vector<8x32xf32>
    %43 = arith.select %37, %35, %42 : vector<8x32xi1>, vector<8x32xf32>
    %cst_20 = arith.constant 1.05070102 : f32
    %44 = vector.broadcast %cst_20 : f32 to vector<8x32xf32>
    %45 = arith.mulf %44, %43 : vector<8x32xf32>
    %46 = vector.shape_cast %45 : vector<8x32xf32> to vector<1x8x32xf32>
    %c0_21 = arith.constant 0 : index
    %c0_22 = arith.constant 0 : index
    %c0_23 = arith.constant 0 : index
    %47 = vector.load %arg7[%c0_21, %c0_22, %c0_23] : memref<1x8x32xf32, #tpu.memory_space<vmem>>, vector<1x8x32xf32>
    tpu.vector_store %arg7[%c0_21, %c0_22, %c0_23], %46 {strides = array<i32>} : memref<1x8x32xf32, #tpu.memory_space<vmem>>, vector<1x8x32xf32>,
    return
  }
  func.func @transform_0(%arg0: i32) -> (i32, i32, i32) {
    %c0_i32 = arith.constant 0 : i32
    %c0_i32_0 = arith.constant 0 : i32
    %c0_i32_1 = arith.constant 0 : i32
    return %arg0, %c0_i32, %c0_i32_0 : i32, i32, i32
  }
  func.func @transform_1(%arg0: i32) -> (i32, i32) {
    %c0_i32 = arith.constant 0 : i32
    %c0_i32_0 = arith.constant 0 : i32
    %c0_i32_1 = arith.constant 0 : i32
    return %c0_i32, %c0_i32_0 : i32, i32
  }
  func.func @transform_2(%arg0: i32) -> (i32, i32) {
    %c0_i32 = arith.constant 0 : i32
    %c0_i32_0 = arith.constant 0 : i32
    %c0_i32_1 = arith.constant 0 : i32
    return %c0_i32, %c0_i32_0 : i32, i32
  }
  func.func @transform_3(%arg0: i32) -> (i32, i32) {
    %c0_i32 = arith.constant 0 : i32
    %c0_i32_0 = arith.constant 0 : i32
    %c0_i32_1 = arith.constant 0 : i32
    return %c0_i32, %c0_i32_0 : i32, i32
  }
  func.func @transform_4(%arg0: i32) -> (i32, i32) {
    %c0_i32 = arith.constant 0 : i32
    %c0_i32_0 = arith.constant 0 : i32
    %c0_i32_1 = arith.constant 0 : i32
    return %c0_i32, %c0_i32_0 : i32, i32
  }
  func.func @transform_5(%arg0: i32) -> (i32, i32) {
    %c0_i32 = arith.constant 0 : i32
    %c0_i32_0 = arith.constant 0 : i32
    %c0_i32_1 = arith.constant 0 : i32
    return %c0_i32, %c0_i32_0 : i32, i32
  }
  func.func @transform_6(%arg0: i32) -> (i32, i32, i32) {
    %c0_i32 = arith.constant 0 : i32
    %c0_i32_0 = arith.constant 0 : i32
    %c0_i32_1 = arith.constant 0 : i32
    return %arg0, %c0_i32, %c0_i32_0 : i32, i32, i32
  }
}

</mosaic_0001>

<bundles_post_ra>
// kernel: tpu_custom_call.1
= control target key start
LH: loop header
LB: loop body
LE: loop exit
PB: predicated region body
PF: predicated region fallthrough
CT: control target
= control target key end

     0   :  { %11 = vsyncpa [#allocation3], 0  ;;  %s1687_s0 = inlined_call_operand.vmem [shape: f32[2,8,32], index: 0, kind: input, shape index: {}]   ;;  %s1688_s1 = inlined_call_operand.vmem [shape: f32[32,32], index: 1, kind: input, shape index: {}]   ;;  %s1689_s2 = inlined_call_operand.vmem [shape: f32[1,32], index: 2, kind: input, shape index: {}]   ;;  %s1690_s3 = inlined_call_operand.vmem [shape: f32[1,32], index: 3, kind: input, shape index: {}]   ;;  %s1691_s4 = inlined_call_operand.vmem [shape: f32[64,32], index: 4, kind: input, shape index: {}]   ;;  %s1692_s5 = inlined_call_operand.vmem [shape: f32[1,32], index: 5, kind: input, shape index: {}]   ;;  %s1693_s6 = inlined_call_operand.hbm [shape: f32[2,8,32], index: 6, kind: output, shape index: {}]  }
   0x1   :  { %13 = vsyncpa [#allocation3 + $0x1], 0  ;;  %s1400_s21 = smov 0   ;;  %s1402_s22 = smov 0  }
   0x2   :  { %s1404_s23 = smov 0   ;;  %s1406_s24 = smov 0  }
   0x3 LB: > { %s1421_s25 = sadd.s32 4294967295, %s1357_s24   ;;  %s1109_s26 = sadd.s32 4294967294, %s1357_s24   ;;  %s1357_s24 = sphi %s1406_s24, %s1699_s24   ;;  %s1353_s23 = sphi %s1404_s23, %s1698_s23   ;;  %s1349_s22 = sphi %s1402_s22, %s1697_s22   ;;  %s1345_s21 = sphi %s1400_s21, %s1696_s21  }
   0x4   : > { %s1425_s27 = sadd.s32 1, %s1357_s24   ;;  %s157_s28 = sadd.s32 1, %s1353_s23 }
   0x5   : > { %s154_s29 = ssub.s32 %s1357_s24, %s1425_s27  ;;  %p167_p0 = scmp.ne.s32.totalorder %s1353_s23, %s1349_s22 }
   0x6   : > { %p155_p1 = scmp.eq.s32.totalorder %s154_s29, 0  ;;  %p168_p2 = scmp.eq.s32.totalorder %s1421_s25, 1 }
   0x7   : > { %p173_p3 = scmp.ne.s32.totalorder %s1349_s22, %s1345_s21  ;;  %p174_p4 = scmp.eq.s32.totalorder %s1109_s26, 1 }
   0x8   : > { %s1436_s30 = scalar_select %p155_p1, %s1353_s23, %s157_s28  }
   0x9   : > { %p1438_p5 = por %p168_p2, %p167_p0  ;;  %p1442_p6 = por %p174_p4, %p173_p3 }
   0xa   : > { %p1112_p7 = scmp.ge.s32.totalorder %s1357_s24, 1  ;;  %p214_p8 = scmp.lt.s32.totalorder %s1357_s24, 3 }
   0xc   : > { %p215_p9 = pnand %p1112_p7, %p214_p8 }
   0xd   : > { %p243_p10 = scmp.lt.s32.totalorder (!%p215_p9), %s1421_s25, 1  ;;  %s1363_s11 = smov (!%p215_p9), 32  }
   0xe   : > { %218 = sbr.rel (%p215_p9) target bundleno = 1452 (0x5ac), region = 44  ;;  %s1130_s17 = sshll.u32 (!%p215_p9), %s1421_s25, 7 }
   0xf   : > { %s1048_s28 = scalar_lea.hbm (!%p215_p9), %s1693_s6, %s1130_s17  ;;  %s1364_s10 = smov (!%p215_p9), [#allocation2]  }
  0x13   : > { %v349_v0 = vld [vmem:[%s1688_s1 + $0x18] sm:$0xff]  ;;  %v348_v1 = vld [vmem:[%s1688_s1 + $0x10] sm:$0xff]  ;;  %v253_v2 = vlaneseq  ;;  %v1359_v3 = vmov 1966171168   ;;  %v347_v5 = vld [vmem:[%s1688_s1 + $0x8] sm:$0xff]  ;;  %s244_s15 = scalar_select %p243_p10, %s1421_s25, 1 }
  0x14   : > { %1156 = vmatprep.subr.mxu0 %v349_v0  ;;  %v251_v4 = vunpack.c.l.s4 %v1359_v3  ;;  %v346_v8 = vld [vmem:[%s1688_s1] sm:$0xff]  ;;  %vm357_vm0 = vcmask 261120   ;;  %vm576_vm1 = vcmask 1041409   ;;  %vm578_vm2 = vcmask 1042434   ;;  %s1301_s25 = sshll.u32 %s1364_s10, 4  ;;  %s1302_s25 = int_to_ptr.vmem [resolvable:$false] %s1301_s25 }
  0x15   : > { %1157 = vmatpush3.msra.mxu0 %v349_v0  ;;  %v1460_v6 = vshrl.u32 %v253_v2, 7  ;;  %s1114_s18 = sshll.u32 %s244_s15, 3  ;;  %v1115_v41 = vld [vmem:[%s1689_s2] ss:$0 sm:$0xff]  ;;  %vm580_vm3 = vcmask 1043459   ;;  %vm582_vm4 = vcmask 1044484  }
  0x16   : > { %1158 = vmatprep.subr.mxu0 %v348_v1  ;;  %v252_v7 = vunpack.c.0.s8 %v251_v4  ;;  %s246_s26 = scalar_lea.vmem %s1687_s0, %s1114_s18  ;;  %v1124_v57 = vld [vmem:[%s1690_s3] ss:$0 sm:$0xff]  ;;  %vm584_vm5 = vcmask 1045509   ;;  %vm586_vm6 = vcmask 1046534   ;;  %vm588_vm7 = vcmask 1047559   ;;  %s240_s15 = sand.u32 1, %s1349_s22  }
  0x17   : > { %1159 = vmatpush3.msra.mxu0 %v348_v1  ;;  %v1469_v10 = vld [vmem:[%s246_s26] sm:$0xff]  ;;  %v1473_v12 = vsub.s32 0, %v1460_v6  ;;  %vm591_vm8 = vcmask 64512   ;;  %vm1362_vm9 = vmmov 0   ;;  %vm954_vm10 = vcmask 523264   ;;  %s1113_s16 = sshll.u32 %s240_s15, 3 }
  0x18   : > { %1160 = vmatprep.subr.mxu0 %v347_v5  ;;  %v255_v9 = vsub.s32 %v252_v7, %v1460_v6  ;;  %v249_v13 = vcombine.high %v1469_v10, %v1469_v10  ;;  %s242_s18 = scalar_lea.vmem [#allocation2], %s1113_s16  ;;  %s1037_s29 = scalar_lea.sflag [#allocation3], %s240_s15 }
  0x19   : > { %1161 = vmatpush3.msra.mxu0 %v347_v5  ;;  %s1050_s19 = sshll.u32 %s242_s18, 4  ;;  %s1051_s19 = int_to_ptr.vmem [resolvable:$true] %s1050_s19 }
  0x1a   : > { %1162 = vmatprep.subr.mxu0 %v346_v8  ;;  %v256_v11 = vrot.slane %v1469_v10, %v255_v9  ;;  %v263_v16 = vrot.slane %v249_v13, %v255_v9  ;;  %s1297_s9 = scalar_lea.vmem %s1051_s19, 128  ;;  %p1304_p0 = scmp.lt.s32.totalorder %s1051_s19, %s1302_s25 }
  0x1b   : > { %1163 = vmatpush3.msra.mxu0 %v346_v8  ;;  %p1298_p11 = scmp.ne.s32.totalorder %s1051_s19, %s1297_s9 }
  0x1c   : > { %v264_v14 = vcombine.high %v256_v11, %v256_v11  ;;  %v272_v15 = vrot.slane %v256_v11, %v255_v9  ;;  %v279_v20 = vrot.slane %v263_v16, %v255_v9  ;;  %v265_v21 = vcombine.high %v263_v16, %v263_v16 }
  0x1d   : > { %p1299_p12 = pnand %p1298_p11, %p1438_p5 }
  0x1e   : > { %v294_v17 = vcombine.high %v272_v15, %v272_v15  ;;  %v301_v18 = vrot.slane %v272_v15, %v1473_v12  ;;  %v286_v19 = vrot.slane %v264_v14, %v255_v9  ;;  %v317_v26 = vrot.slane %v279_v20, %v1473_v12 }
  0x1f   : > { %v293_v27 = vrot.slane %v265_v21, %v255_v9  ;;  %v295_v28 = vcombine.high %v279_v20, %v279_v20  ;;  %p1300_p13 = pneg %p1299_p12 }
  0x20   : > { %v338_v22 = vmul.f32 %v301_v18, %v1469_v10  ;;  %v305_v23 = vrot.slane %v286_v19, %v1473_v12  ;;  %v309_v24 = vrot.slane %v294_v17, %v1473_v12  ;;  %v296_v25 = vcombine.high %v286_v19, %v286_v19 }
  0x21   : > { %v321_v33 = vrot.slane %v293_v27, %v1473_v12  ;;  %v297_v34 = vcombine.high %v293_v27, %v293_v27  ;;  %v342_v35 = vmul.f32 %v317_v26, %v1469_v10  ;;  %v325_v36 = vrot.slane %v295_v28, %v1473_v12 }
  0x22   : > { %1164 = vmatprep.mubr.msk.f32.mxu0 %vm357_vm0, %v338_v22  ;;  %v339_v29 = vmul.f32 %v305_v23, %v1469_v10  ;;  %v340_v30 = vmul.f32 %v309_v24, %v1469_v10  ;;  %v313_v31 = vrot.slane %v296_v25, %v1473_v12  ;;  %v543_v23 = vand.u32 127, %v253_v2 }
  0x23   : > { %v343_v37 = vmul.f32 %v321_v33, %v1469_v10  ;;  %v329_v38 = vrot.slane %v297_v34, %v1473_v12  ;;  %v344_v39 = vmul.f32 %v325_v36, %v1469_v10 }
  0x24   : > { %1165 = vmatmul.mubr.msk.f32.vlgmr.msra.gmra.mxu0 %vm357_vm0, %v339_v29  ;;  %v341_v32 = vmul.f32 %v313_v31, %v1469_v10  ;;  %v1517_v25 = vsub.s32 %v543_v23, %v1460_v6 }
  0x25   : > { %1167 = vmatprep.mubr.msk.f32.mxu0 %vm357_vm0, %v340_v30  ;;  %v345_v40 = vmul.f32 %v329_v38, %v1469_v10 }
  0x28   : > { %1168 = vmatmul.mubr.msk.f32.gmra.mxu0 %vm357_vm0, %v341_v32 }
  0x29   : > { %1170 = vmatprep.mubr.msk.f32.mxu0 %vm357_vm0, %v342_v35 }
  0x2c   : > { %1171 = vmatmul.mubr.msk.f32.gmra.mxu0 %vm357_vm0, %v343_v37 }
  0x2d   : > { %1173 = vmatprep.mubr.msk.f32.mxu0 %vm357_vm0, %v344_v39 }
  0x30   : > { %1174 = vmatmul.mubr.msk.f32.gmra.mxu0 %vm357_vm0, %v345_v40 }
  0xe4   : > { %v1166_v42 = vpop.f32.mrf.mxu0 }
  0xe5   : > { %v454_v43 = vadd.f32 %v1166_v42, %v1115_v41 }
  0xe6   : > { %v448_v44 = vpop.f32.mrf.mxu0 }
  0xe7   : > { %1247 = vtanh.f32 %v454_v43  ;;  %v449_v45 = vadd.f32 %v1115_v41, %v448_v44 }
  0xe8   : > { %v1169_v46 = vpop.f32.mrf.mxu0 }
  0xe9   : > { %1249 = vtanh.f32 %v449_v45  ;;  %v464_v47 = vadd.f32 %v1169_v46, %v1115_v41 }
  0xea   : > { %v458_v48 = vpop.f32.mrf.mxu0 }
  0xeb   : > { %1251 = vtanh.f32 %v464_v47  ;;  %v459_v49 = vadd.f32 %v1115_v41, %v458_v48  ;;  %v1360_v48 = vmov 0  }
  0xec   : > { %v1172_v50 = vpop.f32.mrf.mxu0  ;;  %1245 = vset.pattern.permute.xlu0 %v1360_v48  ;;  %1244 = vset.pattern.permute.xlu1 %v1360_v48 }
  0xed   : > { %1253 = vtanh.f32 %v459_v49  ;;  %v474_v51 = vadd.f32 %v1172_v50, %v1115_v41  ;;  %v602_v49 = vsub.s32 1, %v1460_v6  ;;  %v606_v50 = vsub.s32 2, %v1460_v6 }
  0xee   : > { %v468_v52 = vpop.f32.mrf.mxu0 }
  0xef   : > { %1255 = vtanh.f32 %v474_v51  ;;  %v469_v53 = vadd.f32 %v1115_v41, %v468_v52  ;;  %v610_v51 = vsub.s32 3, %v1460_v6 }
  0xf0   : > { %v1175_v54 = vpop.f32.mrf.mxu0 }
  0xf1   : > { %1257 = vtanh.f32 %v469_v53  ;;  %v484_v55 = vadd.f32 %v1175_v54, %v1115_v41 }
  0xf2   : > { %v478_v56 = vpop.f32.mrf.mxu0 }
  0xf3   : > { %1259 = vtanh.f32 %v484_v55  ;;  %v479_v58 = vadd.f32 %v1115_v41, %v478_v56  ;;  %v614_v56 = vsub.s32 4, %v1460_v6 }
  0xf4   : > { %v1248_v59 = vpop.eup %1247 }
  0xf5   : > { %1261 = vtanh.f32 %v479_v58  ;;  %v503_v60 = vmul.f32 %v1248_v59, %v1124_v57 }
  0xf6   : > { %v1250_v61 = vpop.eup %1249 }
  0xf7   : > { %v513_v62 = vsel %vm357_vm0, %v503_v60, 0.0  ;;  %v502_v63 = vmul.f32 %v1250_v61, %v1124_v57 }
  0xf8   : > { %v1252_v0 = vpop.eup %1251  ;;  %514 = vadd.xlane.f32.xlu0 %v513_v62 }
  0xf9   : > { %v505_v1 = vmul.f32 %v1252_v0, %v1124_v57  ;;  %v510_v4 = vsel %vm357_vm0, %v502_v63, 0.0  ;;  %v618_v63 = vsub.s32 5, %v1460_v6 }
  0xfa   : > { %v1254_v3 = vpop.eup %1253 }
  0xfb   : > { %v519_v5 = vsel %vm357_vm0, %v505_v1, 0.0  ;;  %v504_v7 = vmul.f32 %v1254_v3, %v1124_v57 }
  0xfc   : > { %v1256_v8 = vpop.eup %1255  ;;  %511 = vadd.xlane.f32.xlu0 %v510_v4  ;;  %520 = vadd.xlane.f32.xlu1 %v519_v5  ;;  %v622_v4 = vsub.s32 6, %v1460_v6 }
  0xfd   : > { %v516_v11 = vsel %vm357_vm0, %v504_v7, 0.0  ;;  %v507_v14 = vmul.f32 %v1256_v8, %v1124_v57 }
  0xfe   : > { %v1258_v9 = vpop.eup %1257 }
  0xff   : > { %v506_v13 = vmul.f32 %v1258_v9, %v1124_v57  ;;  %v525_v18 = vsel %vm357_vm0, %v507_v14, 0.0  ;;  %v626_v9 = vsub.s32 7, %v1460_v6  ;;  %v1361_v6 = vmov 0.0  }
 0x100   : > { %v1260_v15 = vpop.eup %1259  ;;  %517 = vadd.xlane.f32.xlu1 %v516_v11  ;;  %1176 = vmatprep.subr.mxu1 %v1361_v6 }
 0x101   : > { %v522_v16 = vsel %vm357_vm0, %v506_v13, 0.0  ;;  %v509_v20 = vmul.f32 %v1260_v15, %v1124_v57  ;;  %1178 = vmatprep.mubr.msk.f32.mxu1 %vm1362_vm9, %v1361_v6  ;;  %1177 = vmatpush3.msra.mxu1 %v1469_v10 }
 0x102   : > { %v1262_v17 = vpop.eup %1261  ;;  %523 = vadd.xlane.f32.xlu0 %v522_v16  ;;  %1181 = vmatprep.subr.mxu1 %v1361_v6 }
 0x103   : > { %v508_v19 = vmul.f32 %v1262_v17, %v1124_v57  ;;  %v531_v22 = vsel %vm357_vm0, %v509_v20, 0.0 }
 0x104   : > { %526 = vadd.xlane.f32.xlu1 %v525_v18 }
 0x105   : > { %v528_v21 = vsel %vm357_vm0, %v508_v19, 0.0 }
 0x106   : > { %529 = vadd.xlane.f32.xlu0 %v528_v21 }
 0x108   : > { %532 = vadd.xlane.f32.xlu1 %v531_v22 }
 0x181   : > { %v515_v24 = vpop.xlane.xlu0 %514 }
 0x182   : > { %v551_v29 = vrot.slane %v515_v24, %v1517_v25 }
 0x185   : > { %v512_v26 = vpop.xlane.xlu0 %511  ;;  %v521_v27 = vpop.xlane.xlu1 %520 }
 0x186   : > { %v547_v28 = vrot.slane %v512_v26, %v1517_v25  ;;  %v559_v2 = vrot.slane %v521_v27, %v1517_v25 }
 0x188   : > { %v577_v32 = vsel %vm576_vm1, %v551_v29, %v547_v28 }
 0x189   : > { %v518_v30 = vpop.xlane.xlu1 %517 }
 0x18a   : > { %v555_v31 = vrot.slane %v518_v30, %v1517_v25 }
 0x18b   : > { %v524_v33 = vpop.xlane.xlu0 %523 }
 0x18c   : > { %v579_v34 = vsel %vm578_vm2, %v555_v31, %v577_v32  ;;  %v563_v35 = vrot.slane %v524_v33, %v1517_v25 }
 0x18d   : > { %v581_v36 = vsel %vm580_vm3, %v559_v2, %v579_v34  ;;  %v527_v37 = vpop.xlane.xlu1 %526 }
 0x18e   : > { %v583_v38 = vsel %vm582_vm4, %v563_v35, %v581_v36  ;;  %v567_v39 = vrot.slane %v527_v37, %v1517_v25 }
 0x18f   : > { %v530_v40 = vpop.xlane.xlu0 %529 }
 0x190   : > { %v571_v41 = vrot.slane %v530_v40, %v1517_v25  ;;  %v585_v42 = vsel %vm584_vm5, %v567_v39, %v583_v38 }
 0x191   : > { %v533_v43 = vpop.xlane.xlu1 %532 }
 0x192   : > { %v575_v44 = vrot.slane %v533_v43, %v1517_v25  ;;  %v587_v45 = vsel %vm586_vm6, %v571_v41, %v585_v42 }
 0x194   : > { %v589_v46 = vsel %vm588_vm7, %v575_v44, %v587_v45 }
 0x195   : > { %v592_v47 = vsel %vm591_vm8, %v589_v46, -inf }
 0x196   : > { %593 = vmax.xlane.f32.xlu0 %v592_v47 }
 0x21f   : > { %v594_v52 = vpop.xlane.xlu0 %593 }
 0x220   : > { %v599_v53 = vrot.slane %v594_v52, %v1473_v12  ;;  %v603_v54 = vrot.slane %v594_v52, %v602_v49  ;;  %v607_v55 = vrot.slane %v594_v52, %v606_v50  ;;  %v611_v57 = vrot.slane %v594_v52, %v610_v51 }
 0x221   : > { %v615_v0 = vrot.slane %v594_v52, %v614_v56  ;;  %v619_v5 = vrot.slane %v594_v52, %v618_v63  ;;  %v623_v11 = vrot.slane %v594_v52, %v622_v4  ;;  %v627_v15 = vrot.slane %v594_v52, %v626_v9 }
 0x222   : > { %v636_v58 = vsub.f32 %v512_v26, %v599_v53  ;;  %v637_v59 = vsub.f32 %v515_v24, %v603_v54  ;;  %v638_v60 = vsub.f32 %v518_v30, %v607_v55  ;;  %v639_v1 = vsub.f32 %v521_v27, %v611_v57 }
 0x223   : > { %v640_v7 = vsub.f32 %v524_v33, %v615_v0  ;;  %v641_v13 = vsub.f32 %v527_v37, %v619_v5  ;;  %v642_v16 = vsub.f32 %v530_v40, %v623_v11  ;;  %v643_v20 = vsub.f32 %v533_v43, %v627_v15 }
 0x224   : > { %v644_v61 = vmul.f32 1.442695, %v636_v58  ;;  %v646_v62 = vmul.f32 1.442695, %v637_v59  ;;  %v648_v3 = vmul.f32 1.442695, %v638_v60 }
 0x225   : > { %v650_v8 = vmul.f32 1.442695, %v639_v1  ;;  %v652_v14 = vmul.f32 1.442695, %v640_v7  ;;  %v654_v17 = vmul.f32 1.442695, %v641_v13 }
 0x226   : > { %1263 = vpow2.f32 %v644_v61  ;;  %v656_v21 = vmul.f32 1.442695, %v642_v16  ;;  %v658_v23 = vmul.f32 1.442695, %v643_v20 }
 0x227   : > { %1265 = vpow2.f32 %v646_v62 }
 0x228   : > { %1267 = vpow2.f32 %v648_v3 }
 0x229   : > { %1269 = vpow2.f32 %v650_v8 }
 0x22a   : > { %1271 = vpow2.f32 %v652_v14 }
 0x22b   : > { %1273 = vpow2.f32 %v654_v17 }
 0x22c   : > { %1275 = vpow2.f32 %v656_v21 }
 0x22d   : > { %1277 = vpow2.f32 %v658_v23 }
 0x233   : > { %v1264_v18 = vpop.eup %1263 }
 0x234   : > { %v1266_v19 = vpop.eup %1265  ;;  %669 = vperm.xlu1 %1244, %v1264_v18  }
 0x235   : > { %672 = vperm.xlu0 %1245, %v1266_v19   ;;  %v1268_v22 = vpop.eup %1267 }
 0x236   : > { %v1270_v24 = vpop.eup %1269 }
 0x237   : > { %v1557_v26 = vpop.eup %1271 }
 0x238   : > { %675 = vperm.xlu1 %1244, %v1268_v22   ;;  %v1560_v27 = vpop.eup %1273 }
 0x239   : > { %v1563_v28 = vpop.eup %1275 }
 0x23a   : > { %v1566_v29 = vpop.eup %1277 }
 0x23c   : > { %678 = vperm.xlu1 %1244, %v1270_v24  }
 0x240   : > { %681 = vperm.xlu1 %1244, %v1557_v26  }
 0x244   : > { %684 = vperm.xlu1 %1244, %v1560_v27  }
 0x248   : > { %687 = vperm.xlu1 %1244, %v1563_v28  }
 0x24c   : > { %690 = vperm.xlu1 %1244, %v1566_v29  }
 0x2af   : > { %v670_v30 = vpop.permute.xlu1 %669 }
 0x2b0   : > { %v673_v33 = vpop.permute.xlu0 %672  ;;  %v695_v36 = vrot.slane %v670_v30, %v1517_v25 }
 0x2b1   : > { %v699_v35 = vrot.slane %v673_v33, %v1517_v25 }
 0x2b3   : > { %v676_v31 = vpop.permute.xlu1 %675  ;;  %v724_v41 = vsel %vm576_vm1, %v699_v35, %v695_v36 }
 0x2b4   : > { %v703_v37 = vrot.slane %v676_v31, %v1517_v25 }
 0x2b6   : > { %v725_v43 = vsel %vm578_vm2, %v703_v37, %v724_v41  ;;  %v943_v41 = vld [vmem:[%s1691_s4 + $0x20] sm:$0xff] }
 0x2b7   : > { %v679_v32 = vpop.permute.xlu1 %678 }
 0x2b8   : > { %v707_v38 = vrot.slane %v679_v32, %v1517_v25 }
 0x2ba   : > { %v726_v45 = vsel %vm580_vm3, %v707_v38, %v725_v43  ;;  %v946_v38 = vld [vmem:[%s1691_s4 + $0x38] sm:$0xff]  ;;  %v941_v43 = vld [vmem:[%s1691_s4 + $0x10] sm:$0xff] }
 0x2bb   : > { %v682_v2 = vpop.permute.xlu1 %681 }
 0x2bc   : > { %v711_v39 = vrot.slane %v682_v2, %v1517_v25 }
 0x2be   : > { %v727_v46 = vsel %vm582_vm4, %v711_v39, %v726_v45  ;;  %v939_v45 = vld [vmem:[%s1691_s4] sm:$0xff] }
 0x2bf   : > { %v685_v34 = vpop.permute.xlu1 %684 }
 0x2c0   : > { %v715_v42 = vrot.slane %v685_v34, %v1517_v25 }
 0x2c2   : > { %v728_v48 = vsel %vm584_vm5, %v715_v42, %v727_v46  ;;  %v942_v42 = vld [vmem:[%s1691_s4 + $0x18] sm:$0xff] }
 0x2c3   : > { %v688_v40 = vpop.permute.xlu1 %687 }
 0x2c4   : > { %v719_v44 = vrot.slane %v688_v40, %v1517_v25  ;;  %v945_v40 = vld [vmem:[%s1691_s4 + $0x30] sm:$0xff] }
 0x2c6   : > { %v729_v53 = vsel %vm586_vm6, %v719_v44, %v728_v48  ;;  %v940_v44 = vld [vmem:[%s1691_s4 + $0x8] sm:$0xff] }
 0x2c7   : > { %v691_v47 = vpop.permute.xlu1 %690 }
 0x2c8   : > { %v723_v52 = vrot.slane %v691_v47, %v1517_v25 }
 0x2ca   : > { %v730_v54 = vsel %vm588_vm7, %v723_v52, %v729_v53  ;;  %v1126_v53 = vld [vmem:[%s1692_s5] ss:$0 sm:$0xff] }
 0x2cb   : > { %v732_v55 = vsel %vm591_vm8, %v730_v54, 0.0 }
 0x2cc   : > { %733 = vadd.xlane.f32.xlu1 %v732_v55 }
 0x2dd   : > { %935 = vrot.lane.b32.xlu1 %v1469_v10, %s1363_s11  ;;  %s1303_s11 = scalar_lea.vmem %s1302_s25, 256 }
 0x2de   : > { %p1305_p1 = scmp.lt.s32.totalorder %s1303_s11, %s1297_s9 }
 0x2e0   : > { %p1306_p2 = por %p1305_p1, %p1304_p0 }
 0x2e2   : > { %p1307_p3 = pnand %p1306_p2, %p1300_p13 }
 0x355   : > { %v734_v57 = vpop.xlane.xlu1 %733 }
 0x356   : > { %v739_v58 = vrot.slane %v734_v57, %v1473_v12  ;;  %v743_v59 = vrot.slane %v734_v57, %v602_v49  ;;  %v747_v60 = vrot.slane %v734_v57, %v606_v50  ;;  %v751_v61 = vrot.slane %v734_v57, %v610_v51 }
 0x357   : > { %v755_v62 = vrot.slane %v734_v57, %v614_v56  ;;  %v759_v12 = vrot.slane %v734_v57, %v618_v63  ;;  %v763_v50 = vrot.slane %v734_v57, %v622_v4  ;;  %v767_v56 = vrot.slane %v734_v57, %v626_v9 }
 0x358   : > { %1279 = vrcp.f32 %v739_v58 }
 0x359   : > { %1281 = vrcp.f32 %v743_v59  ;;  %v936_v46 = vpop.permute.xlu1 %935 }
 0x35a   : > { %1283 = vrcp.f32 %v747_v60 }
 0x35b   : > { %1285 = vrcp.f32 %v751_v61 }
 0x35c   : > { %1287 = vrcp.f32 %v755_v62 }
 0x35d   : > { %1289 = vrcp.f32 %v759_v12 }
 0x35e   : > { %1291 = vrcp.f32 %v763_v50 }
 0x35f   : > { %1293 = vrcp.f32 %v767_v56 }
 0x365   : > { %v1280_v0 = vpop.eup %1279 }
 0x366   : > { %v777_v1 = vmul.f32 %v1280_v0, %v1264_v18  ;;  %v1282_v49 = vpop.eup %1281 }
 0x367   : > { %v779_v3 = vmul.f32 %v1282_v49, %v1266_v19  ;;  %v1284_v5 = vpop.eup %1283 }
 0x368   : > { %801 = vperm.xlu0 %1245, %v777_v1   ;;  %v781_v51 = vmul.f32 %v1284_v5, %v1268_v22  ;;  %v1286_v7 = vpop.eup %1285 }
 0x369   : > { %v783_v8 = vmul.f32 %v1286_v7, %v1270_v24  ;;  %v1288_v11 = vpop.eup %1287 }
 0x36a   : > { %v785_v63 = vmul.f32 %v1288_v11, %v1557_v26  ;;  %v1290_v13 = vpop.eup %1289 }
 0x36b   : > { %v787_v14 = vmul.f32 %v1290_v13, %v1560_v27  ;;  %v1292_v4 = vpop.eup %1291 }
 0x36c   : > { %804 = vperm.xlu0 %1245, %v779_v3   ;;  %v789_v15 = vmul.f32 %v1292_v4, %v1563_v28  ;;  %v1294_v16 = vpop.eup %1293 }
 0x36d   : > { %v791_v9 = vmul.f32 %v1294_v16, %v1566_v29 }
 0x370   : > { %807 = vperm.xlu0 %1245, %v781_v51  }
 0x374   : > { %810 = vperm.xlu0 %1245, %v783_v8  }
 0x378   : > { %813 = vperm.xlu0 %1245, %v785_v63  }
 0x37c   : > { %816 = vperm.xlu0 %1245, %v787_v14  }
 0x380   : > { %819 = vperm.xlu0 %1245, %v789_v15  }
 0x384   : > { %822 = vperm.xlu0 %1245, %v791_v9  }
 0x3e3   : > { %v802_v17 = vpop.permute.xlu0 %801 }
 0x3e4   : > { %v827_v26 = vrot.slane %v802_v17, %v1517_v25 }
 0x3e7   : > { %v805_v18 = vpop.permute.xlu0 %804 }
 0x3e8   : > { %v831_v23 = vrot.slane %v805_v18, %v1517_v25 }
 0x3ea   : > { %v856_v30 = vsel %vm576_vm1, %v831_v23, %v827_v26 }
 0x3eb   : > { %v808_v19 = vpop.permute.xlu0 %807 }
 0x3ec   : > { %v835_v24 = vrot.slane %v808_v19, %v1517_v25 }
 0x3ee   : > { %v857_v31 = vsel %vm578_vm2, %v835_v24, %v856_v30 }
 0x3ef   : > { %v811_v20 = vpop.permute.xlu0 %810 }
 0x3f0   : > { %v839_v27 = vrot.slane %v811_v20, %v1517_v25 }
 0x3f2   : > { %v858_v2 = vsel %vm580_vm3, %v839_v27, %v857_v31 }
 0x3f3   : > { %v814_v21 = vpop.permute.xlu0 %813 }
 0x3f4   : > { %v843_v28 = vrot.slane %v814_v21, %v1517_v25 }
 0x3f6   : > { %v859_v33 = vsel %vm582_vm4, %v843_v28, %v858_v2 }
 0x3f7   : > { %v817_v22 = vpop.permute.xlu0 %816 }
 0x3f8   : > { %v847_v10 = vrot.slane %v817_v22, %v1517_v25 }
 0x3fa   : > { %v860_v35 = vsel %vm584_vm5, %v847_v10, %v859_v33 }
 0x3fb   : > { %v820_v29 = vpop.permute.xlu0 %819 }
 0x3fc   : > { %v851_v32 = vrot.slane %v820_v29, %v1517_v25 }
 0x3fe   : > { %v861_v37 = vsel %vm586_vm6, %v851_v32, %v860_v35 }
 0x3ff   : > { %v823_v34 = vpop.permute.xlu0 %822 }
 0x400   : > { %v855_v36 = vrot.slane %v823_v34, %v1517_v25  ;;  %v944_v25 = vld [vmem:[%s1691_s4 + $0x28] sm:$0xff] }
 0x402   : > { %v862_v39 = vsel %vm588_vm7, %v855_v36, %v861_v37 }
 0x403   : > { %1179 = vmatmul.mubr.msk.f32.vlgmr.msra.gmra.mxu1 %vm591_vm8, %v862_v39 }
 0x404   : > { %1182 = vmatpush3.msra.mxu1 %v946_v38  ;;  %1197 = vmatprep.mubr.msk.f32.mxu1 %vm1362_vm9, %v1361_v6 }
 0x405   : > { %1183 = vmatprep.subr.mxu1 %v1361_v6 }
 0x406   : > { %1184 = vmatpush3.msra.mxu1 %v945_v40 }
 0x407   : > { %1185 = vmatprep.subr.mxu1 %v1361_v6 }
 0x408   : > { %1186 = vmatpush3.msra.mxu1 %v944_v25 }
 0x409   : > { %1187 = vmatprep.subr.mxu1 %v1361_v6 }
 0x40a   : > { %1188 = vmatpush3.msra.mxu1 %v943_v41 }
 0x40b   : > { %1189 = vmatprep.subr.mxu1 %v1361_v6 }
 0x40c   : > { %1190 = vmatpush3.msra.mxu1 %v942_v42 }
 0x40d   : > { %1191 = vmatprep.subr.mxu1 %v1361_v6 }
 0x40e   : > { %1192 = vmatpush3.msra.mxu1 %v941_v43 }
 0x40f   : > { %1193 = vmatprep.subr.mxu1 %v1361_v6 }
 0x410   : > { %1194 = vmatpush3.msra.mxu1 %v940_v44 }
 0x411   : > { %1195 = vmatprep.subr.mxu1 %v1361_v6 }
 0x412   : > { %1196 = vmatpush3.msra.mxu1 %v939_v45 }
 0x4c3   : > { %v931_v47 = vpop.f32.mrf.mxu1 }
 0x4c4   : > { %v938_v48 = vsel %vm357_vm0, %v931_v47, %v936_v46 }
 0x4c5   : > { %v1180_v52 = vpop.f32.mrf.mxu1  ;;  %1198 = vmatmul.mubr.msk.f32.vlgmr.msra.gmra.mxu1 %vm954_vm10, %v938_v48 }
 0x585   : > { %v1024_v54 = vpop.f32.mrf.mxu1 }
 0x586   : > { %v1025_v55 = vadd.f32 %v1126_v53, %v1024_v54 }
 0x587   : > { %v1199_v57 = vpop.f32.mrf.mxu1 }
 0x588   : > { %v1029_v58 = vmul.f32 1.442695, %v1025_v55  ;;  %vm1028_vm11 = vcmp.gt.f32.partialorder %v1025_v55, 0.0 }
 0x58a   : > { %1295 = vpow2.f32 %v1029_v58 }
 0x597   : > { %v1296_v59 = vpop.eup %1295 }
 0x598   : > { %v1128_v60 = vadd.f32 -1.0, %v1296_v59 }
 0x59a   : > { %v1032_v61 = vmul.f32 1.6732632, %v1128_v60 }
 0x59c   : > { %v1033_v62 = vsel %vm1028_vm11, %v1025_v55, %v1032_v61 }
 0x59d   : > { %v1034_v0 = vmul.f32 1.050701, %v1033_v62 }
 0x59f   : > { %1035 = vst.msk [vmem:[%s242_s18] sm:$0xff] %vm357_vm0, %v1034_v0 }
 0x5a0   : > { %1310 = shalt.err (!%p1307_p3)
}
 0x5a1   : > { %s1311_s12 = scalar_lea.hbm %s1048_s28, 128  ;;  %s1315_s15 = scalar_lea.hbm %s1693_s6, 256 }
 0x5a2   : > { %p1312_p4 = scmp.ne.s32.totalorder %s1048_s28, %s1311_s12  ;;  %p1316_p9 = scmp.lt.s32.totalorder %s1048_s28, %s1693_s6 }
 0x5a3   : > { %p1317_p10 = scmp.lt.s32.totalorder %s1315_s15, %s1311_s12 }
 0x5a4   : > { %p1313_p7 = pnand %p1312_p4, %p1438_p5 }
 0x5a5   : > { %p1318_p11 = por %p1317_p10, %p1316_p9 }
 0x5a6   : > { %p1314_p8 = pneg %p1313_p7 }
 0x5a8   : > { %p1319_p12 = pnand %p1318_p11, %p1314_p8 }
 0x5aa   : > { %1322 = shalt.err (!%p1319_p12)
}
 0x5ab   : > { %1200 = dma.vmem_to_hbm [thread:$0]  (%p1438_p5), %s1051_s19, 128, %s1048_s28, %s1037_s29  }
 0x5ac PF: > { %p1206_p13 = scmp.ge.s32.totalorder %s1357_s24, 2  ;;  %s1062_s18 = sand.u32 1, %s1345_s21  }
 0x5ad   : > { %s1063_s20 = scalar_lea.sflag [#allocation3], %s1062_s18 }
 0x5ae   : > { %p1203_p0 = pnand %p1206_p13, %p1442_p6 }
 0x5b0   : > { %p1204_p1 = pneg %p1203_p0 }
 0x5b2   : > { %1340 = dma.done.wait (%p1204_p1), %s1063_s20, 128  }
 0x5b3   : > { %1342 = vsyncadd (%p1204_p1), %s1063_s20, 4294967168  ;;  %p16_p2 = scmp.ge.s32.totalorder %s1425_s27, 4   ;;  %s1696_s21 = smov %s1349_s22 }
 0x5b4   : > { %s1697_s22 = smov %s1353_s23  ;;  %s1698_s23 = smov %s1436_s30 }
 0x5b5   : > { %s1699_s24 = smov %s1425_s27  ;;  %18 = sbr.rel (!%p16_p2) target bundleno = 3 (0x3), region = 79 }
 0x5ba   :  { %1068 = vsyncpa [#allocation3], 1 }
 0x5bb   :  { %1070 = vsyncpa [#allocation3 + $0x1], 1 }

</bundles_post_ra>
